<compile_context>
chip_gen: v7x
topology: tpu7x:2x2x1
jax: 0.10.0
libtpu: 0.0.40
codegen_flags: <defaults>
</compile_context>

<pallas_src>
import functools
import math

import jax
import jax.numpy as jnp
from jax.experimental import pallas as pl
from jax.experimental.pallas import tpu as pltpu


def _crop_offsets(height: int, width: int, size: int, spatial_idx: int):
    """Exactly mirrors uniform_crop()'s offset logic (scale_size=None)."""
    assert spatial_idx in (0, 1, 2)
    y_offset = int(math.ceil((height - size) / 2))
    x_offset = int(math.ceil((width - size) / 2))
    if height > width:
        if spatial_idx == 0:
            y_offset = 0
        elif spatial_idx == 2:
            y_offset = height - size
    else:
        if spatial_idx == 0:
            x_offset = 0
        elif spatial_idx == 2:
            x_offset = width - size
    return y_offset, x_offset


def _pick_frames_per_block(n_frames: int, h: int, w: int, itemsize: int,
                           budget_bytes: int = 2 << 20) -> int:
    """Largest divisor of n_frames whose (Tb, H, W) input block fits the budget."""
    best = 1
    for tb in range(1, n_frames + 1):
        if n_frames % tb == 0 and tb * h * w * itemsize <= budget_bytes:
            best = tb
    return best


def _make_fused_crop_kernel(offsets, size: int):
    def kernel(x_ref, *o_refs):
        # x_ref: (Tb, H, W) batch of frames in VMEM; one output ref per crop.
        # Static slices on the ref -> straight vld/vst copies, no compute.
        for (y0, x0), o_ref in zip(offsets, o_refs):
            o_ref[...] = x_ref[:, y0:y0 + size, x0:x0 + size]
    return kernel


@functools.lru_cache(maxsize=None)
def _build_fused_crop_call(n_frames: int, h: int, w: int, dtype_name: str,
                           size: int, offsets: tuple):
    dtype = jnp.dtype(dtype_name)
    itemsize = dtype.itemsize
    tb = _pick_frames_per_block(n_frames, h, w, itemsize)
    num_crops = len(offsets)

    in_block_bytes = tb * h * w * itemsize
    out_block_bytes = tb * size * size * itemsize * num_crops
    # Double-buffered working set + margin; floor/cap so it is valid on
    # v5e/v6e (128 MiB physical) and v7x (64 MiB physical).
    needed = 2 * (in_block_bytes + out_block_bytes) + (2 << 20)
    vmem_bytes = int(min(max(needed, 16 << 20), 64 << 20))

    kernel = _make_fused_crop_kernel(offsets, size)
    return pl.pallas_call(
        kernel,
        out_shape=tuple(
            jax.ShapeDtypeStruct((n_frames, size, size), dtype)
            for _ in range(num_crops)
        ),
        grid=(n_frames // tb,),
        in_specs=[pl.BlockSpec((tb, h, w), lambda i: (i, 0, 0))],
        out_specs=tuple(
            pl.BlockSpec((tb, size, size), lambda i: (i, 0, 0))
            for _ in range(num_crops)
        ),
        compiler_params=pltpu.CompilerParams(
            dimension_semantics=("parallel",),
            vmem_limit_bytes=vmem_bytes,
        ),
    )


def pallas_spatial_crops(video: jax.Array, size: int, spatial_idxs) -> list:
    """video: (C, T, H, W) -> [ (C, T, size, size) for each spatial_idx ]."""
    C, T, H, W = video.shape
    assert H >= size and W >= size, "crop_size must fit inside the frame"
    offsets = tuple(_crop_offsets(H, W, size, s) for s in spatial_idxs)

    call = _build_fused_crop_call(
        C * T, H, W, jnp.dtype(video.dtype).name, size, offsets
    )
    flat = video.reshape(C * T, H, W)          # leading-dim reshape: free
    outs = call(flat)
    if not isinstance(outs, (tuple, list)):
        outs = (outs,)
    return [o.reshape(C, T, size, size) for o in outs]


class SpatialCrop:
    """JAX/Pallas port of imagebind SpatialCrop (no parameters)."""

    def __init__(self, crop_size: int = 224, num_crops: int = 3):
        self.crop_size = crop_size
        if num_crops == 3:
            self.crops_to_ext = [0, 1, 2]
            self.flipped_crops_to_ext = []
        elif num_crops == 1:
            self.crops_to_ext = [1]
            self.flipped_crops_to_ext = []
        else:
            raise NotImplementedError("Nothing else supported yet")

    def __call__(self, videos):
        assert isinstance(videos, list), "Must be a list of videos after temporal crops"
        assert all(v.ndim == 4 for v in videos), "Must be (C,T,H,W)"
        res = []
        for video in videos:
            # One fused pallas_call per video: each frame is read from HBM once
            # and all crops are written from that single pass.
            res.extend(pallas_spatial_crops(video, self.crop_size, self.crops_to_ext))
            # flipped_crops_to_ext is always empty for the supported configs.
        return res


def _reference_uniform_crop(video, size, spatial_idx):
    y0, x0 = _crop_offsets(video.shape[2], video.shape[3], size, spatial_idx)
    return video[:, :, y0:y0 + size, x0:x0 + size]


if __name__ == "__main__":
    key = jax.random.PRNGKey(0)
    k1, k2 = jax.random.split(key)

    CROP = 8
    # Two small videos: one wide (H <= W branch) and one tall (H > W branch).
    video_wide = jax.random.normal(k1, (4, 2, 12, 16), dtype=jnp.float32)
    video_tall = jax.random.normal(k2, (4, 2, 16, 12), dtype=jnp.float32)
    videos = [video_wide, video_tall]

    # num_crops=3 path
    module3 = SpatialCrop(crop_size=CROP, num_crops=3)
    outs3 = jax.block_until_ready(module3(videos))

    expected3 = []
    for video in videos:
        for spatial_idx in [0, 1, 2]:
            expected3.append(_reference_uniform_crop(video, CROP, spatial_idx))

    assert len(outs3) == len(expected3) == 6
    for got, ref in zip(outs3, expected3):
        assert got.shape == ref.shape == (4, 2, CROP, CROP), got.shape
        assert got.dtype == ref.dtype
        assert bool(jnp.array_equal(got, ref)), "mismatch vs reference crop (3-crop)"

    # num_crops=1 path
    module1 = SpatialCrop(crop_size=CROP, num_crops=1)
    outs1 = jax.block_until_ready(module1(videos))
    expected1 = [_reference_uniform_crop(v, CROP, 1) for v in videos]
    assert len(outs1) == len(expected1) == 2
    for got, ref in zip(outs1, expected1):
        assert got.shape == ref.shape == (4, 2, CROP, CROP)
        assert bool(jnp.array_equal(got, ref)), "mismatch vs reference crop (1-crop)"

    print("KERNEL_OK")
</pallas_src>

<mosaic_0001>
module attributes {stable_mosaic.version = 11 : i64} {
  func.func @kernel(%arg0: i32, %arg1: memref<8x12x16xf32, #tpu.memory_space<vmem>>, %arg2: memref<8x8x8xf32, #tpu.memory_space<vmem>>, %arg3: memref<8x8x8xf32, #tpu.memory_space<vmem>>, %arg4: memref<8x8x8xf32, #tpu.memory_space<vmem>>) attributes {dimension_semantics = [#tpu.dimension_semantics<parallel>], iteration_bounds = array<i64: 1>, scalar_prefetch = 0 : i64, scratch_operands = 0 : i64, tpu.core_type = #tpu.core_type<tc>, window_params = [{transform_indices = @transform_0, window_bounds = array<i64: 8, 12, 16>}, {transform_indices = @transform_1, window_bounds = array<i64: 8, 8, 8>}, {transform_indices = @transform_2, window_bounds = array<i64: 8, 8, 8>}, {transform_indices = @transform_3, window_bounds = array<i64: 8, 8, 8>}]} {
    %c0 = arith.constant 0 : index
    %c2 = arith.constant 2 : index
    %c0_0 = arith.constant 0 : index
    %0 = vector.load %arg1[%c0, %c2, %c0_0] : memref<8x12x16xf32, #tpu.memory_space<vmem>>, vector<8x8x8xf32>
    %c0_1 = arith.constant 0 : index
    %c0_2 = arith.constant 0 : index
    %c0_3 = arith.constant 0 : index
    %1 = vector.load %arg2[%c0_1, %c0_2, %c0_3] : memref<8x8x8xf32, #tpu.memory_space<vmem>>, vector<8x8x8xf32>
    tpu.vector_store %arg2[%c0_1, %c0_2, %c0_3], %0 {strides = array<i32>} : memref<8x8x8xf32, #tpu.memory_space<vmem>>, vector<8x8x8xf32>,
    %c0_4 = arith.constant 0 : index
    %c2_5 = arith.constant 2 : index
    %c4 = arith.constant 4 : index
    %2 = vector.load %arg1[%c0_4, %c2_5, %c4] : memref<8x12x16xf32, #tpu.memory_space<vmem>>, vector<8x8x8xf32>
    %c0_6 = arith.constant 0 : index
    %c0_7 = arith.constant 0 : index
    %c0_8 = arith.constant 0 : index
    %3 = vector.load %arg3[%c0_6, %c0_7, %c0_8] : memref<8x8x8xf32, #tpu.memory_space<vmem>>, vector<8x8x8xf32>
    tpu.vector_store %arg3[%c0_6, %c0_7, %c0_8], %2 {strides = array<i32>} : memref<8x8x8xf32, #tpu.memory_space<vmem>>, vector<8x8x8xf32>,
    %c0_9 = arith.constant 0 : index
    %c2_10 = arith.constant 2 : index
    %c8 = arith.constant 8 : index
    %4 = vector.load %arg1[%c0_9, %c2_10, %c8] : memref<8x12x16xf32, #tpu.memory_space<vmem>>, vector<8x8x8xf32>
    %c0_11 = arith.constant 0 : index
    %c0_12 = arith.constant 0 : index
    %c0_13 = arith.constant 0 : index
    %5 = vector.load %arg4[%c0_11, %c0_12, %c0_13] : memref<8x8x8xf32, #tpu.memory_space<vmem>>, vector<8x8x8xf32>
    tpu.vector_store %arg4[%c0_11, %c0_12, %c0_13], %4 {strides = array<i32>} : memref<8x8x8xf32, #tpu.memory_space<vmem>>, vector<8x8x8xf32>,
    return
  }
  func.func @transform_0(%arg0: i32) -> (i32, i32, i32) {
    %c0_i32 = arith.constant 0 : i32
    %c0_i32_0 = arith.constant 0 : i32
    %c0_i32_1 = arith.constant 0 : i32
    return %arg0, %c0_i32, %c0_i32_0 : i32, i32, i32
  }
  func.func @transform_1(%arg0: i32) -> (i32, i32, i32) {
    %c0_i32 = arith.constant 0 : i32
    %c0_i32_0 = arith.constant 0 : i32
    %c0_i32_1 = arith.constant 0 : i32
    return %arg0, %c0_i32, %c0_i32_0 : i32, i32, i32
  }
  func.func @transform_2(%arg0: i32) -> (i32, i32, i32) {
    %c0_i32 = arith.constant 0 : i32
    %c0_i32_0 = arith.constant 0 : i32
    %c0_i32_1 = arith.constant 0 : i32
    return %arg0, %c0_i32, %c0_i32_0 : i32, i32, i32
  }
  func.func @transform_3(%arg0: i32) -> (i32, i32, i32) {
    %c0_i32 = arith.constant 0 : i32
    %c0_i32_0 = arith.constant 0 : i32
    %c0_i32_1 = arith.constant 0 : i32
    return %arg0, %c0_i32, %c0_i32_0 : i32, i32, i32
  }
}

</mosaic_0001>

<bundles_post_ra>
// kernel: tpu_custom_call.1
= control target key start
LH: loop header
LB: loop body
LE: loop exit
PB: predicated region body
PF: predicated region fallthrough
CT: control target
= control target key end

     0   :  { %9 = vsyncpa [#allocation3], 0  ;;  %vm21_vm0 = vcmask 64512   ;;  %s250_s18 = smov 124   ;;  %s370_s0 = inlined_call_operand.vmem [shape: f32[8,12,16], index: 0, kind: input, shape index: {}]   ;;  %s371_s1 = inlined_call_operand.hbm [shape: f32[8,8,8], index: 1, kind: output, shape index: {0}]   ;;  %s372_s2 = inlined_call_operand.hbm [shape: f32[8,8,8], index: 2, kind: output, shape index: {1}]   ;;  %s373_s3 = inlined_call_operand.hbm [shape: f32[8,8,8], index: 3, kind: output, shape index: {2}]  }
   0x1   :  { %v32_v0 = vld [vmem:[%s370_s0 + $0x22] sm:$0xff]  ;;  %v33_v2 = vld [vmem:[%s370_s0 + $0x32] sm:$0xff] }
   0x2   :  { %v30_v1 = vld [vmem:[%s370_s0 + $0x2] sm:$0xff]  ;;  %50 = vrot.lane.b32.xlu1 %v32_v0, %s250_s18  ;;  %v31_v3 = vld [vmem:[%s370_s0 + $0x12] sm:$0xff]  ;;  %24 = vst.msk [vmem:[#allocation2 + $0x10] sm:$0xff] %vm21_vm0, %v32_v0  ;;  %25 = vst.msk [vmem:[#allocation2 + $0x18] sm:$0xff] %vm21_vm0, %v33_v2 }
   0x3   :  { %46 = vrot.lane.b32.xlu0 %v30_v1, %s250_s18  ;;  %v35_v4 = vld [vmem:[%s370_s0 + $0x52] sm:$0xff]  ;;  %22 = vst.msk [vmem:[#allocation2] sm:$0xff] %vm21_vm0, %v30_v1  ;;  %v34_v5 = vld [vmem:[%s370_s0 + $0x42] sm:$0xff]  ;;  %23 = vst.msk [vmem:[#allocation2 + $0x8] sm:$0xff] %vm21_vm0, %v31_v3 }
   0x4   :  { %v37_v6 = vld [vmem:[%s370_s0 + $0x72] sm:$0xff]  ;;  %v36_v7 = vld [vmem:[%s370_s0 + $0x62] sm:$0xff]  ;;  %27 = vst.msk [vmem:[#allocation2 + $0x28] sm:$0xff] %vm21_vm0, %v35_v4 }
   0x5   :  { %10 = vsyncpa [#allocation5], 0  ;;  %26 = vst.msk [vmem:[#allocation2 + $0x20] sm:$0xff] %vm21_vm0, %v34_v5  ;;  %s251_s29 = smov [#allocation2]   ;;  %s252_s0 = smov 120  }
   0x6   :  { %28 = vst.msk [vmem:[#allocation2 + $0x30] sm:$0xff] %vm21_vm0, %v36_v7  ;;  %29 = vst.msk [vmem:[#allocation2 + $0x38] sm:$0xff] %vm21_vm0, %v37_v6  ;;  %52 = vrot.lane.b32.xlu1 %v33_v2, %s250_s18  ;;  %s131_s30 = sshll.u32 %s251_s29, 4  ;;  %s132_s30 = int_to_ptr.vmem [resolvable:$true] %s131_s30 }
   0x7   :  { %48 = vrot.lane.b32.xlu0 %v31_v3, %s250_s18  ;;  %s180_s4 = scalar_lea.vmem %s132_s30, 1024  ;;  %p185_p1 = scmp.lt.s32.totalorder %s132_s30, %s132_s30 }
   0x8   :  { %p181_p0 = scmp.ne.s32.totalorder %s132_s30, %s180_s4  ;;  %p186_p2 = scmp.lt.s32.totalorder %s180_s4, %s180_s4 }
   0xa   :  { %56 = vrot.lane.b32.xlu1 %v35_v4, %s250_s18  ;;  %p187_p3 = por %p186_p2, %p185_p1 }
   0xb   :  { %54 = vrot.lane.b32.xlu0 %v34_v5, %s250_s18 }
   0xc   :  { %p188_p4 = pnand %p187_p3, %p181_p0 }
   0xe   :  { %60 = vrot.lane.b32.xlu1 %v37_v6, %s250_s18 }
   0xf   :  { %58 = vrot.lane.b32.xlu0 %v36_v7, %s250_s18 }
  0x12   :  { %96 = vrot.lane.b32.xlu1 %v31_v3, %s252_s0 }
  0x13   :  { %94 = vrot.lane.b32.xlu0 %v30_v1, %s252_s0 }
  0x14   :  { %191 = shalt.err (!%p188_p4)
}
  0x15   :  { %s192_s7 = scalar_lea.hbm %s371_s1, 1024 }
  0x16   :  { %p193_p5 = scmp.ne.s32.totalorder %s371_s1, %s192_s7  ;;  %p196_p6 = scmp.lt.u32.totalorder %s192_s7, %s371_s1 }
  0x18   :  { %p198_p7 = pnand %p196_p6, %p193_p5 }
  0x1a   :  { %201 = shalt.err (!%p198_p7)
}
  0x1b   :  { %s253_s12 = smov 128   ;;  %s254_s13 = smov 8   ;;  %100 = vrot.lane.b32.xlu1 %v33_v2, %s252_s0  ;;  %98 = vrot.lane.b32.xlu0 %v32_v0, %s252_s0 }
  0x1c   :  { %137 = dma.vmem_to_hbm [thread:$0]  %s132_s30, 1024, %s371_s1, [#allocation3], %s253_s12, %s253_s12, %s254_s13  }
  0x1d   :  { %s255_s1 = smov [#allocation4]  }
  0x1e   :  { %s143_s16 = sshll.u32 %s255_s1, 4  ;;  %s144_s16 = int_to_ptr.vmem [resolvable:$true] %s143_s16 }
  0x1f   :  { %104 = vrot.lane.b32.xlu1 %v35_v4, %s252_s0  ;;  %102 = vrot.lane.b32.xlu0 %v34_v5, %s252_s0  ;;  %s202_s17 = scalar_lea.vmem %s144_s16, 1024  ;;  %p207_p9 = scmp.lt.s32.totalorder %s144_s16, %s144_s16 }
  0x20   :  { %p203_p8 = scmp.ne.s32.totalorder %s144_s16, %s202_s17  ;;  %p208_p10 = scmp.lt.s32.totalorder %s202_s17, %s202_s17 }
  0x22   :  { %p209_p11 = por %p208_p10, %p207_p9 }
  0x23   :  { %108 = vrot.lane.b32.xlu1 %v37_v6, %s252_s0  ;;  %106 = vrot.lane.b32.xlu0 %v36_v7, %s252_s0 }
  0x24   :  { %p210_p12 = pnand %p209_p11, %p203_p8 }
  0x74   :  { %v51_v8 = vpop.permute.xlu1 %50 }
  0x75   :  { %v47_v9 = vpop.permute.xlu0 %46  ;;  %72 = vst.msk [vmem:[#allocation4 + $0x10] sm:$0xff] %vm21_vm0, %v51_v8 }
  0x76   :  { %70 = vst.msk [vmem:[#allocation4] sm:$0xff] %vm21_vm0, %v47_v9 }
  0x78   :  { %v53_v10 = vpop.permute.xlu1 %52 }
  0x79   :  { %v49_v11 = vpop.permute.xlu0 %48  ;;  %73 = vst.msk [vmem:[#allocation4 + $0x18] sm:$0xff] %vm21_vm0, %v53_v10 }
  0x7a   :  { %71 = vst.msk [vmem:[#allocation4 + $0x8] sm:$0xff] %vm21_vm0, %v49_v11 }
  0x7c   :  { %v57_v12 = vpop.permute.xlu1 %56 }
  0x7d   :  { %v55_v13 = vpop.permute.xlu0 %54  ;;  %75 = vst.msk [vmem:[#allocation4 + $0x28] sm:$0xff] %vm21_vm0, %v57_v12 }
  0x7e   :  { %74 = vst.msk [vmem:[#allocation4 + $0x20] sm:$0xff] %vm21_vm0, %v55_v13 }
  0x80   :  { %v61_v14 = vpop.permute.xlu1 %60 }
  0x81   :  { %v59_v15 = vpop.permute.xlu0 %58  ;;  %77 = vst.msk [vmem:[#allocation4 + $0x38] sm:$0xff] %vm21_vm0, %v61_v14 }
  0x82   :  { %76 = vst.msk [vmem:[#allocation4 + $0x30] sm:$0xff] %vm21_vm0, %v59_v15 }
  0x83   :  { %213 = shalt.err (!%p210_p12)
}
  0x84   :  { %s214_s20 = scalar_lea.hbm %s372_s2, 1024 }
  0x85   :  { %p215_p13 = scmp.ne.s32.totalorder %s372_s2, %s214_s20  ;;  %p218_p0 = scmp.lt.u32.totalorder %s214_s20, %s372_s2 }
  0x87   :  { %p220_p1 = pnand %p218_p0, %p215_p13 }
  0x89   :  { %223 = shalt.err (!%p220_p1)
}
  0x8a   :  { %149 = dma.vmem_to_hbm [thread:$0]  %s144_s16, 1024, %s372_s2, [#allocation5], %s253_s12, %s253_s12, %s254_s13   ;;  %v97_v16 = vpop.permute.xlu1 %96  ;;  %v95_v17 = vpop.permute.xlu0 %94 }
  0x8b   :  { %119 = vst.msk [vmem:[#allocation6 + $0x8] sm:$0xff] %vm21_vm0, %v97_v16  ;;  %118 = vst.msk [vmem:[#allocation6] sm:$0xff] %vm21_vm0, %v95_v17  ;;  %s256_s27 = smov [#allocation6]  }
  0x8c   :  { %s155_s28 = sshll.u32 %s256_s27, 4  ;;  %s156_s28 = int_to_ptr.vmem [resolvable:$true] %s155_s28 }
  0x8d   :  { %s224_s2 = scalar_lea.vmem %s156_s28, 1024  ;;  %p229_p3 = scmp.lt.s32.totalorder %s156_s28, %s156_s28 }
  0x8e   :  { %v101_v18 = vpop.permute.xlu1 %100  ;;  %v99_v19 = vpop.permute.xlu0 %98  ;;  %p225_p2 = scmp.ne.s32.totalorder %s156_s28, %s224_s2  ;;  %p230_p4 = scmp.lt.s32.totalorder %s224_s2, %s224_s2 }
  0x8f   :  { %121 = vst.msk [vmem:[#allocation6 + $0x18] sm:$0xff] %vm21_vm0, %v101_v18  ;;  %120 = vst.msk [vmem:[#allocation6 + $0x10] sm:$0xff] %vm21_vm0, %v99_v19 }
  0x90   :  { %p231_p5 = por %p230_p4, %p229_p3 }
  0x92   :  { %v105_v20 = vpop.permute.xlu1 %104  ;;  %v103_v21 = vpop.permute.xlu0 %102  ;;  %p232_p6 = pnand %p231_p5, %p225_p2 }
  0x93   :  { %123 = vst.msk [vmem:[#allocation6 + $0x28] sm:$0xff] %vm21_vm0, %v105_v20  ;;  %122 = vst.msk [vmem:[#allocation6 + $0x20] sm:$0xff] %vm21_vm0, %v103_v21 }
  0x96   :  { %v109_v22 = vpop.permute.xlu1 %108  ;;  %v107_v23 = vpop.permute.xlu0 %106 }
  0x97   :  { %125 = vst.msk [vmem:[#allocation6 + $0x38] sm:$0xff] %vm21_vm0, %v109_v22  ;;  %124 = vst.msk [vmem:[#allocation6 + $0x30] sm:$0xff] %vm21_vm0, %v107_v23 }
  0x98   :  { %235 = shalt.err (!%p232_p6)
}
  0x99   :  { %s236_s0 = scalar_lea.hbm %s373_s3, 1024 }
  0x9a   :  { %p237_p7 = scmp.ne.s32.totalorder %s373_s3, %s236_s0  ;;  %p240_p8 = scmp.lt.u32.totalorder %s236_s0, %s373_s3 }
  0x9c   :  { %p242_p9 = pnand %p240_p8, %p237_p7 }
  0x9e   :  { %245 = shalt.err (!%p242_p9)
}
  0x9f   :  { %161 = dma.vmem_to_hbm [thread:$0]  %s156_s28, 1024, %s373_s3, [#allocation5], %s253_s12, %s253_s12, %s254_s13  }
  0xa0   :  { %246 = dma.done.wait [#allocation3], 1024  }
  0xa1   :  { %247 = vsyncadd [#allocation3], 4294966272 }
  0xa2   :  { %248 = dma.done.wait [#allocation5], 2048  }
  0xa3   :  { %249 = vsyncadd [#allocation5], 4294965248 }
  0xa4   :  { %171 = vsyncpa [#allocation3], 1 }
  0xa5   :  { %172 = vsyncpa [#allocation5], 1 }

</bundles_post_ra>
